<compile_context>
chip_gen: v7x
topology: tpu7x:2x2x1
jax: 0.10.0
libtpu: 0.0.40
codegen_flags: <defaults>
</compile_context>

<pallas_src>
import jax
import jax.numpy as jnp
from jax.experimental import pallas as pl
from jax.experimental.pallas import tpu as pltpu

_LANE = 128


def _round_up(x, m):
    return ((x + m - 1) // m) * m


def _ccp3_kernel(z_ref, u_ref, c_ref, beta_ref, o_ref):
    z = z_ref[...]                                  # (tb, z_dim)
    u = u_ref[...]                                  # (z_dim, 3*rank_p)
    rank_p = u.shape[1] // 3

    # One MXU contraction for all three U projections; f32 accumulation.
    h_raw = jnp.dot(z, u, preferred_element_type=jnp.float32)   # (tb, 3*rank_p)

    # 128-lane-aligned slices (rank_p is a multiple of 128).
    h1 = h_raw[:, 0:rank_p]
    zu2 = h_raw[:, rank_p:2 * rank_p]
    zu3 = h_raw[:, 2 * rank_p:3 * rank_p]

    # Hadamard-product recursion in f32 on the VPU (padded lanes stay zero).
    h2 = zu2 * h1 + h1
    h3 = zu3 * h2 + h2

    # Output projection + bias + tanh (EUP), lane-dense (out_p multiple of 128).
    out = jnp.dot(h3.astype(c_ref.dtype), c_ref[...],
                  preferred_element_type=jnp.float32) + beta_ref[...]
    o_ref[...] = jnp.tanh(out).astype(o_ref.dtype)


def generator_cp_l3(z, u1, u2, u3, c, beta, *, tb=512, matmul_dtype=jnp.float32):
    """Pallas forward pass of Generator_CP_L3.

    z      : (B, z_dim)  float32
    u1/2/3 : (z_dim, rank)
    c      : (rank, out_dim)
    beta   : (out_dim,)
    tb     : batch tile (sweep 256-1024 for large B; clamped to padded B)
    matmul_dtype : jnp.float32 (exact) or jnp.bfloat16 (v6e/v7x MXU fast path)
    returns (B, out_dim) float32
    """
    B, z_dim = z.shape
    rank = u1.shape[1]
    out_dim = c.shape[1]

    rank_p = _round_up(rank, _LANE)     # pad each rank slice to 128 lanes
    out_p = _round_up(out_dim, _LANE)   # lane-dense output (unmasked stores)

    # Clamp the tile to the (8-aligned) batch, then pad the batch to a multiple
    # of the tile so there is no divisibility requirement on B.
    tb_eff = max(8, min(tb, _round_up(B, 8)))
    B_p = _round_up(B, tb_eff)

    mm_dt = matmul_dtype

    # Batch tile of z (skip the pad copy when already aligned).
    z_c = z.astype(mm_dt)
    z_p = z_c if B_p == B else jnp.zeros((B_p, z_dim), mm_dt).at[:B, :].set(z_c)

    # Fused, lane-padded U weight: columns [k*rank_p, k*rank_p+rank) hold U_k.
    if rank_p == rank:
        u123 = jnp.concatenate(
            [u1.astype(mm_dt), u2.astype(mm_dt), u3.astype(mm_dt)], axis=1)
    else:
        u123 = jnp.zeros((z_dim, 3 * rank_p), mm_dt)
        u123 = u123.at[:, 0 * rank_p:0 * rank_p + rank].set(u1.astype(mm_dt))
        u123 = u123.at[:, 1 * rank_p:1 * rank_p + rank].set(u2.astype(mm_dt))
        u123 = u123.at[:, 2 * rank_p:2 * rank_p + rank].set(u3.astype(mm_dt))

    c_c = c.astype(mm_dt)
    if rank_p == rank and out_p == out_dim:
        c_p = c_c
    else:
        c_p = jnp.zeros((rank_p, out_p), mm_dt).at[:rank, :out_dim].set(c_c)

    beta_f32 = beta.astype(jnp.float32)
    if out_p == out_dim:
        beta_p = beta_f32.reshape(1, out_p)
    else:
        beta_p = jnp.zeros((1, out_p), jnp.float32).at[0, :out_dim].set(beta_f32)

    grid = (B_p // tb_eff,)
    out = pl.pallas_call(
        _ccp3_kernel,
        out_shape=jax.ShapeDtypeStruct((B_p, out_p), jnp.float32),
        grid=grid,
        in_specs=[
            pl.BlockSpec((tb_eff, z_dim), lambda i: (i, 0)),        # z tile
            pl.BlockSpec((z_dim, 3 * rank_p), lambda i: (0, 0)),    # U1|U2|U3
            pl.BlockSpec((rank_p, out_p), lambda i: (0, 0)),        # C
            pl.BlockSpec((1, out_p), lambda i: (0, 0)),             # beta
        ],
        out_specs=pl.BlockSpec((tb_eff, out_p), lambda i: (i, 0)),
        compiler_params=pltpu.CompilerParams(
            dimension_semantics=("parallel",),
        ),
    )(z_p, u123, c_p, beta_p)

    if B_p == B and out_p == out_dim:
        return out
    return out[:B, :out_dim]


def reference_cp_l3(z, u1, u2, u3, c, beta):
    h1 = z @ u1
    h2 = (z @ u2) * h1 + h1
    h3 = (z @ u3) * h2 + h2
    return jnp.tanh(h3 @ c + beta)


if __name__ == "__main__":
    # Small shapes consistent with the module: z_dim=16, rank=32, output=64.
    B, Z_DIM, RANK, OUT = 64, 16, 32, 64

    key = jax.random.PRNGKey(0)
    kz, k1, k2, k3, kc, kb = jax.random.split(key, 6)

    z = jax.random.normal(kz, (B, Z_DIM), dtype=jnp.float32)
    # Deterministic synthetic parameters (scaled roughly like nn.Linear init).
    u1 = jax.random.normal(k1, (Z_DIM, RANK), dtype=jnp.float32) / jnp.sqrt(Z_DIM)
    u2 = jax.random.normal(k2, (Z_DIM, RANK), dtype=jnp.float32) / jnp.sqrt(Z_DIM)
    u3 = jax.random.normal(k3, (Z_DIM, RANK), dtype=jnp.float32) / jnp.sqrt(Z_DIM)
    c = jax.random.normal(kc, (RANK, OUT), dtype=jnp.float32) / jnp.sqrt(RANK)
    beta = jax.random.normal(kb, (OUT,), dtype=jnp.float32) * 0.01

    ref = reference_cp_l3(z, u1, u2, u3, c, beta)

    # f32 path: exact match against the reference.
    out = generator_cp_l3(z, u1, u2, u3, c, beta)
    out = jax.block_until_ready(out)
    assert out.shape == (B, OUT)
    assert jnp.allclose(out, ref, atol=1e-5, rtol=1e-5), "f32 mismatch vs reference"

    # bf16 matmul path (v6e/v7x fast path): f32 accumulation, looser tolerance
    # because the degree-3 Hadamard recursion amplifies rounding.
    out_bf16 = generator_cp_l3(z, u1, u2, u3, c, beta, matmul_dtype=jnp.bfloat16)
    out_bf16 = jax.block_until_ready(out_bf16)
    assert out_bf16.shape == (B, OUT)
    assert jnp.allclose(out_bf16, ref, atol=1e-1, rtol=1e-1), "bf16 mismatch vs reference"

    print("KERNEL_OK")
</pallas_src>

<mosaic_0001>
module attributes {stable_mosaic.version = 11 : i64} {
  func.func @_ccp3_kernel(%arg0: i32, %arg1: memref<64x16xf32, #tpu.memory_space<vmem>>, %arg2: memref<16x384xf32, #tpu.memory_space<vmem>>, %arg3: memref<128x128xf32, #tpu.memory_space<vmem>>, %arg4: memref<1x128xf32, #tpu.memory_space<vmem>>, %arg5: memref<64x128xf32, #tpu.memory_space<vmem>>) attributes {dimension_semantics = [#tpu.dimension_semantics<parallel>], iteration_bounds = array<i64: 1>, scalar_prefetch = 0 : i64, scratch_operands = 0 : i64, tpu.core_type = #tpu.core_type<tc>, window_params = [{transform_indices = @transform_0, window_bounds = array<i64: 64, 16>}, {pipeline_mode = #tpu.pipeline_mode<synchronous>, transform_indices = @transform_1, window_bounds = array<i64: 16, 384>}, {pipeline_mode = #tpu.pipeline_mode<synchronous>, transform_indices = @transform_2, window_bounds = array<i64: 128, 128>}, {pipeline_mode = #tpu.pipeline_mode<synchronous>, transform_indices = @transform_3, window_bounds = array<i64: 1, 128>}, {transform_indices = @transform_4, window_bounds = array<i64: 64, 128>}]} {
    %c0 = arith.constant 0 : index
    %c0_0 = arith.constant 0 : index
    %0 = vector.load %arg1[%c0, %c0_0] : memref<64x16xf32, #tpu.memory_space<vmem>>, vector<64x16xf32>
    %c0_1 = arith.constant 0 : index
    %c0_2 = arith.constant 0 : index
    %1 = vector.load %arg2[%c0_1, %c0_2] : memref<16x384xf32, #tpu.memory_space<vmem>>, vector<16x384xf32>
    %cst = arith.constant dense<0.000000e+00> : vector<64x384xf32>
    %2 = tpu.matmul %0, %1, %cst {dimension_numbers = #tpu.dot_dimension_numbers<[1], [0], [0], [1], [0, 0, 1, 1], [], []>} : vector<64x16xf32>, vector<16x384xf32>, vector<64x384xf32> -> vector<64x384xf32>
    %3 = vector.extract_strided_slice %2 {offsets = [0, 0], sizes = [64, 128], strides = [1, 1]} : vector<64x384xf32> to vector<64x128xf32>
    %4 = vector.extract_strided_slice %2 {offsets = [0, 128], sizes = [64, 128], strides = [1, 1]} : vector<64x384xf32> to vector<64x128xf32>
    %5 = vector.extract_strided_slice %2 {offsets = [0, 256], sizes = [64, 128], strides = [1, 1]} : vector<64x384xf32> to vector<64x128xf32>
    %6 = arith.mulf %4, %3 : vector<64x128xf32>
    %7 = arith.addf %6, %3 : vector<64x128xf32>
    %8 = arith.mulf %5, %7 : vector<64x128xf32>
    %9 = arith.addf %8, %7 : vector<64x128xf32>
    %c0_3 = arith.constant 0 : index
    %c0_4 = arith.constant 0 : index
    %10 = vector.load %arg3[%c0_3, %c0_4] : memref<128x128xf32, #tpu.memory_space<vmem>>, vector<128x128xf32>
    %cst_5 = arith.constant dense<0.000000e+00> : vector<64x128xf32>
    %11 = tpu.matmul %9, %10, %cst_5 {dimension_numbers = #tpu.dot_dimension_numbers<[1], [0], [0], [1], [0, 0, 1, 1], [], []>} : vector<64x128xf32>, vector<128x128xf32>, vector<64x128xf32> -> vector<64x128xf32>
    %c0_6 = arith.constant 0 : index
    %c0_7 = arith.constant 0 : index
    %12 = vector.load %arg4[%c0_6, %c0_7] : memref<1x128xf32, #tpu.memory_space<vmem>>, vector<1x128xf32>
    %13 = vector.broadcast %12 : vector<1x128xf32> to vector<64x128xf32>
    %14 = arith.addf %11, %13 : vector<64x128xf32>
    %15 = math.tanh %14 : vector<64x128xf32>
    %c0_8 = arith.constant 0 : index
    %c0_9 = arith.constant 0 : index
    %16 = vector.load %arg5[%c0_8, %c0_9] : memref<64x128xf32, #tpu.memory_space<vmem>>, vector<64x128xf32>
    tpu.vector_store %arg5[%c0_8, %c0_9], %15 {strides = array<i32>} : memref<64x128xf32, #tpu.memory_space<vmem>>, vector<64x128xf32>,
    return
  }
  func.func @transform_0(%arg0: i32) -> (i32, i32) {
    %c0_i32 = arith.constant 0 : i32
    %c0_i32_0 = arith.constant 0 : i32
    return %arg0, %c0_i32 : i32, i32
  }
  func.func @transform_1(%arg0: i32) -> (i32, i32) {
    %c0_i32 = arith.constant 0 : i32
    %c0_i32_0 = arith.constant 0 : i32
    %c0_i32_1 = arith.constant 0 : i32
    return %c0_i32, %c0_i32_0 : i32, i32
  }
  func.func @transform_2(%arg0: i32) -> (i32, i32) {
    %c0_i32 = arith.constant 0 : i32
    %c0_i32_0 = arith.constant 0 : i32
    %c0_i32_1 = arith.constant 0 : i32
    return %c0_i32, %c0_i32_0 : i32, i32
  }
  func.func @transform_3(%arg0: i32) -> (i32, i32) {
    %c0_i32 = arith.constant 0 : i32
    %c0_i32_0 = arith.constant 0 : i32
    %c0_i32_1 = arith.constant 0 : i32
    return %c0_i32, %c0_i32_0 : i32, i32
  }
  func.func @transform_4(%arg0: i32) -> (i32, i32) {
    %c0_i32 = arith.constant 0 : i32
    %c0_i32_0 = arith.constant 0 : i32
    return %arg0, %c0_i32 : i32, i32
  }
}

</mosaic_0001>

<bundles_post_ra>
// kernel: tpu_custom_call.1
= control target key start
LH: loop header
LB: loop body
LE: loop exit
PB: predicated region body
PF: predicated region fallthrough
CT: control target
= control target key end

     0   :  { %9 = vsyncpa [#allocation3], 0  ;;  %s847_s0 = inlined_call_operand.vmem [shape: f32[64,16], index: 0, kind: input, shape index: {}]   ;;  %s848_s1 = inlined_call_operand.vmem [shape: f32[16,384], index: 1, kind: input, shape index: {}]   ;;  %s849_s2 = inlined_call_operand.hbm [shape: f32[128,128], index: 2, kind: input, shape index: {}]   ;;  %s850_s3 = inlined_call_operand.vmem [shape: f32[1,128], index: 3, kind: input, shape index: {}]   ;;  %s851_s4 = inlined_call_operand.hbm [shape: f32[64,128], index: 4, kind: output, shape index: {}]  }
   0x1   :  { %10 = vsyncpa [#allocation4], 0  ;;  %s718_s15 = smov [#allocation2]   ;;  %s670_s19 = scalar_lea.hbm %s849_s2, 2048 }
   0x2   :  { %s20_s16 = sshll.u32 %s718_s15, 4  ;;  %p671_p0 = scmp.ne.s32.totalorder %s849_s2, %s670_s19  ;;  %s21_s16 = int_to_ptr.vmem [resolvable:$true] %s20_s16 }
   0x3   :  { %p674_p1 = scmp.lt.u32.totalorder %s670_s19, %s849_s2 }
   0x5   :  { %p676_p2 = pnand %p674_p1, %p671_p0 }
   0x7   :  { %679 = shalt.err (!%p676_p2)
}
   0x8   :  { %s680_s24 = scalar_lea.vmem %s21_s16, 2048  ;;  %p685_p4 = scmp.lt.s32.totalorder %s21_s16, %s21_s16 }
   0x9   :  { %p681_p3 = scmp.ne.s32.totalorder %s21_s16, %s680_s24  ;;  %p686_p5 = scmp.lt.s32.totalorder %s680_s24, %s680_s24 }
   0xb   :  { %p687_p6 = por %p686_p5, %p685_p4 }
   0xd   :  { %p688_p7 = pnand %p687_p6, %p681_p3 }
   0xf   :  { %691 = shalt.err (!%p688_p7)
}
  0x10   :  { %s719_s25 = smov 128   ;;  %s720_s26 = smov 8  }
  0x11   :  { %26 = dma.hbm_to_vmem [thread:$0]  %s849_s2, 2048, %s21_s16, [#allocation3], %s719_s25, %s719_s25, %s720_s26  }
  0x12   :  { %714 = dma.done.wait [#allocation3], 2048  }
  0x13   :  { %715 = vsyncadd [#allocation3], 4294965248  ;;  %v721_v0 = vmov 0.0   ;;  %v41_v1 = vld [vmem:[%s848_s1 + $0x8] sm:$0xff]  ;;  %v44_v2 = vld [vmem:[%s848_s1 + $0x20] sm:$0xff]  ;;  %vm46_vm0 = vcmask 130048  }
  0x14   :  { %135 = vmatprep.mubr.f32.mxu0 %v721_v0  ;;  %v40_v3 = vld [vmem:[%s848_s1] sm:$0xff]  ;;  %v593_v4 = vpack.c.bf16 %v44_v2, %v41_v1  ;;  %v43_v5 = vld [vmem:[%s848_s1 + $0x18] sm:$0xff]  ;;  %v42_v7 = vld [vmem:[%s848_s1 + $0x10] sm:$0xff] }
  0x15   :  { %v32_v6 = vld [vmem:[%s847_s0] sm:$0xff]  ;;  %v595_v8 = vpack.c.bf16 %v43_v5, %v40_v3  ;;  %v45_v9 = vld [vmem:[%s848_s1 + $0x28] sm:$0xff]  ;;  %v321_v11 = vld [vmem:[#allocation2] sm:$0xff] }
  0x16   :  { %537 = vmatprep.mubr.msk.f32.mxu1 %vm46_vm0, %v32_v6  ;;  %594 = vmatprep.subr.bf16.mxu0 %v593_v4  ;;  %v597_v10 = vpack.c.bf16 %v45_v9, %v42_v7  ;;  %v322_v12 = vld [vmem:[#allocation2 + $0x8] sm:$0xff]  ;;  %v323_v13 = vld [vmem:[#allocation2 + $0x10] sm:$0xff]  ;;  %v324_v14 = vld [vmem:[#allocation2 + $0x18] sm:$0xff] }
  0x17   :  { %596 = vmatpush1.bf16.msra.mxu0 %v595_v8  ;;  %v33_v15 = vld [vmem:[%s847_s0 + $0x8] sm:$0xff]  ;;  %v601_v16 = vpack.c.bf16 %v322_v12, %v321_v11  ;;  %v605_v17 = vpack.c.bf16 %v324_v14, %v323_v13  ;;  %v325_v18 = vld [vmem:[#allocation2 + $0x20] sm:$0xff]  ;;  %v326_v19 = vld [vmem:[#allocation2 + $0x28] sm:$0xff] }
  0x18   :  { %598 = vmatprep.subr.bf16.mxu1 %v597_v10  ;;  %v34_v20 = vld [vmem:[%s847_s0 + $0x10] sm:$0xff]  ;;  %v35_v21 = vld [vmem:[%s847_s0 + $0x18] sm:$0xff]  ;;  %v609_v22 = vpack.c.bf16 %v326_v19, %v325_v18  ;;  %v327_v23 = vld [vmem:[#allocation2 + $0x30] sm:$0xff] }
  0x19   :  { %600 = vmatpush3.bf16.msra.mxu1 %v597_v10  ;;  %602 = vmatprep.subr.bf16.mxu0 %v601_v16  ;;  %v328_v24 = vld [vmem:[#allocation2 + $0x38] sm:$0xff]  ;;  %v36_v25 = vld [vmem:[%s847_s0 + $0x20] sm:$0xff]  ;;  %v329_v28 = vld [vmem:[#allocation2 + $0x40] sm:$0xff] }
  0x1a   :  { %482 = vmatmul.mubr.msk.f32.vlgmr.msra.gmra.mrb[0].mxu0 %vm46_vm0, %v32_v6  ;;  %633 = vmatprep.subr.bf16.mxu1 %v601_v16  ;;  %v37_v26 = vld [vmem:[%s847_s0 + $0x28] sm:$0xff]  ;;  %v613_v27 = vpack.c.bf16 %v328_v24, %v327_v23  ;;  %v330_v29 = vld [vmem:[#allocation2 + $0x48] sm:$0xff]  ;;  %v38_v30 = vld [vmem:[%s847_s0 + $0x30] sm:$0xff] }
  0x1b   :  { %141 = vmatprep.mubr.f32.mxu0 %v721_v0  ;;  %604 = vmatpush3.bf16.msra.mxu0 %v601_v16  ;;  %v39_v31 = vld [vmem:[%s847_s0 + $0x38] sm:$0xff]  ;;  %v617_v32 = vpack.c.bf16 %v330_v29, %v329_v28  ;;  %v331_v33 = vld [vmem:[#allocation2 + $0x50] sm:$0xff]  ;;  %v332_v34 = vld [vmem:[#allocation2 + $0x58] sm:$0xff] }
  0x1c   :  { %538 = vmatmul.mubr.msk.f32.vlgmr.msra.gmra.mrb[0].mxu1 %vm46_vm0, %v33_v15  ;;  %606 = vmatprep.subr.bf16.mxu0 %v605_v17  ;;  %v621_v35 = vpack.c.bf16 %v332_v34, %v331_v33  ;;  %v333_v36 = vld [vmem:[#allocation2 + $0x60] sm:$0xff]  ;;  %v334_v37 = vld [vmem:[#allocation2 + $0x68] sm:$0xff]  ;;  %v335_v39 = vld [vmem:[#allocation2 + $0x70] sm:$0xff] }
  0x1d   :  { %540 = vmatprep.mubr.msk.f32.mxu1 %vm46_vm0, %v34_v20  ;;  %641 = vmatpush3.bf16.msra.mxu1 %v601_v16  ;;  %v625_v38 = vpack.c.bf16 %v334_v37, %v333_v36  ;;  %v336_v40 = vld [vmem:[#allocation2 + $0x78] sm:$0xff]  ;;  %v498_v34 = vld [vmem:[%s850_s3] ss:$0 sm:$0xff]  ;;  %s722_s3 = smov [#allocation5]  }
  0x1e   :  { %483 = vmatmul.mubr.msk.f32.gmra.mrb[2].mxu0 %vm46_vm0, %v33_v15  ;;  %634 = vmatprep.subr.bf16.mxu1 %v605_v17  ;;  %v629_v41 = vpack.c.bf16 %v336_v40, %v335_v39  ;;  %s470_s6 = sshll.u32 %s722_s3, 4  ;;  %s471_s6 = int_to_ptr.vmem [resolvable:$true] %s470_s6 }
  0x1f   :  { %147 = vmatprep.mubr.f32.mxu0 %v721_v0  ;;  %608 = vmatpush3.bf16.msra.mxu0 %v605_v17  ;;  %s692_s7 = scalar_lea.vmem %s471_s6, 1024  ;;  %p697_p9 = scmp.lt.s32.totalorder %s471_s6, %s471_s6 }
  0x20   :  { %541 = vmatmul.mubr.msk.f32.gmra.mrb[2].mxu1 %vm46_vm0, %v35_v21  ;;  %610 = vmatprep.subr.bf16.mxu0 %v609_v22  ;;  %p693_p8 = scmp.ne.s32.totalorder %s471_s6, %s692_s7  ;;  %p698_p10 = scmp.lt.s32.totalorder %s692_s7, %s692_s7 }
  0x21   :  { %543 = vmatprep.mubr.msk.f32.mxu1 %vm46_vm0, %v36_v25  ;;  %642 = vmatpush3.bf16.msra.mxu1 %v605_v17 }
  0x22   :  { %484 = vmatmul.mubr.msk.f32.gmra.mrb[4].mxu0 %vm46_vm0, %v34_v20  ;;  %635 = vmatprep.subr.bf16.mxu1 %v609_v22  ;;  %p699_p11 = por %p698_p10, %p697_p9 }
  0x23   :  { %153 = vmatprep.mubr.f32.mxu0 %v721_v0  ;;  %612 = vmatpush3.bf16.msra.mxu0 %v609_v22 }
  0x24   :  { %544 = vmatmul.mubr.msk.f32.gmra.mrb[4].mxu1 %vm46_vm0, %v37_v26  ;;  %614 = vmatprep.subr.bf16.mxu0 %v613_v27  ;;  %p700_p12 = pnand %p699_p11, %p693_p8 }
  0x25   :  { %546 = vmatprep.mubr.msk.f32.mxu1 %vm46_vm0, %v38_v30  ;;  %643 = vmatpush3.bf16.msra.mxu1 %v609_v22 }
  0x26   :  { %485 = vmatmul.mubr.msk.f32.gmra.mrb[6].mxu0 %vm46_vm0, %v35_v21  ;;  %636 = vmatprep.subr.bf16.mxu1 %v613_v27 }
  0x27   :  { %159 = vmatprep.mubr.f32.mxu0 %v721_v0  ;;  %616 = vmatpush3.bf16.msra.mxu0 %v613_v27 }
  0x28   :  { %547 = vmatmul.mubr.msk.f32.gmra.mrb[6].mxu1 %vm46_vm0, %v39_v31  ;;  %618 = vmatprep.subr.bf16.mxu0 %v617_v32 }
  0x29   :  { %644 = vmatpush3.bf16.msra.mxu1 %v613_v27 }
  0x2a   :  { %486 = vmatmul.mubr.msk.f32.gmra.mrb[8].mxu0 %vm46_vm0, %v36_v25  ;;  %637 = vmatprep.subr.bf16.mxu1 %v617_v32 }
  0x2b   :  { %165 = vmatprep.mubr.f32.mxu0 %v721_v0  ;;  %620 = vmatpush3.bf16.msra.mxu0 %v617_v32 }
  0x2c   :  { %622 = vmatprep.subr.bf16.mxu0 %v621_v35 }
  0x2d   :  { %645 = vmatpush3.bf16.msra.mxu1 %v617_v32 }
  0x2e   :  { %487 = vmatmul.mubr.msk.f32.gmra.mrb[10].mxu0 %vm46_vm0, %v37_v26  ;;  %638 = vmatprep.subr.bf16.mxu1 %v621_v35 }
  0x2f   :  { %171 = vmatprep.mubr.f32.mxu0 %v721_v0  ;;  %624 = vmatpush3.bf16.msra.mxu0 %v621_v35 }
  0x30   :  { %626 = vmatprep.subr.bf16.mxu0 %v625_v38 }
  0x31   :  { %646 = vmatpush3.bf16.msra.mxu1 %v621_v35 }
  0x32   :  { %488 = vmatmul.mubr.msk.f32.gmra.mrb[12].mxu0 %vm46_vm0, %v38_v30  ;;  %639 = vmatprep.subr.bf16.mxu1 %v625_v38 }
  0x33   :  { %177 = vmatprep.mubr.f32.mxu0 %v721_v0  ;;  %628 = vmatpush3.bf16.msra.mxu0 %v625_v38 }
  0x34   :  { %630 = vmatprep.subr.bf16.mxu0 %v629_v41 }
  0x35   :  { %647 = vmatpush3.bf16.msra.mxu1 %v625_v38 }
  0x36   :  { %489 = vmatmul.mubr.msk.f32.gmra.mrb[14].mxu0 %vm46_vm0, %v39_v31  ;;  %640 = vmatprep.subr.bf16.mxu1 %v629_v41 }
  0x37   :  { %632 = vmatpush3.bf16.msra.mxu0 %v629_v41 }
  0x39   :  { %648 = vmatpush3.bf16.msra.mxu1 %v629_v41 }
  0xed   :  { %v137_v42 = vpop.f32.mrb[0].mxu0 }
  0xee   :  { %v139_v43 = vpop.f32.mrb[1].mxu0 }
  0xef   :  { %v289_v44 = vmul.f32 %v139_v43, %v137_v42  ;;  %v539_v45 = vpop.f32.mrb[0].mxu1 }
  0xf0   :  { %v250_v46 = vpop.f32.mrb[1].mxu1 }
  0xf1   :  { %v143_v47 = vpop.f32.mrb[2].mxu0  ;;  %v297_v48 = vadd.f32 %v289_v44, %v137_v42 }
  0xf2   :  { %v145_v49 = vpop.f32.mrb[3].mxu0 }
  0xf3   :  { %v290_v50 = vmul.f32 %v145_v49, %v143_v47  ;;  %v305_v51 = vmul.f32 %v297_v48, %v250_v46  ;;  %v542_v52 = vpop.f32.mrb[2].mxu1 }
  0xf4   :  { %v260_v53 = vpop.f32.mrb[3].mxu1 }
  0xf5   :  { %v298_v54 = vadd.f32 %v290_v50, %v143_v47  ;;  %v313_v55 = vadd.f32 %v305_v51, %v297_v48  ;;  %v149_v56 = vpop.f32.mrb[4].mxu0 }
  0xf6   :  { %v151_v57 = vpop.f32.mrb[5].mxu0 }
  0xf7   :  { %v306_v58 = vmul.f32 %v539_v45, %v298_v54  ;;  %v291_v59 = vmul.f32 %v151_v57, %v149_v56  ;;  %581 = vmatprep.mubr.f32.mxu0 %v313_v55  ;;  %v545_v60 = vpop.f32.mrb[4].mxu1 }
  0xf8   :  { %v270_v61 = vpop.f32.mrb[5].mxu1 }
  0xf9   :  { %v314_v62 = vadd.f32 %v306_v58, %v298_v54  ;;  %v155_v63 = vpop.f32.mrb[6].mxu0  ;;  %v299_v0 = vadd.f32 %v291_v59, %v149_v56 }
  0xfa   :  { %v157_v1 = vpop.f32.mrb[7].mxu0 }
  0xfb   :  { %v292_v2 = vmul.f32 %v157_v1, %v155_v63  ;;  %v307_v3 = vmul.f32 %v299_v0, %v260_v53  ;;  %582 = vmatmul.mubr.f32.vlgmr.msra.gmra.mrb[16].mxu0 %v314_v62  ;;  %v548_v4 = vpop.f32.mrb[6].mxu1 }
  0xfc   :  { %v280_v5 = vpop.f32.mrb[7].mxu1 }
  0xfd   :  { %v300_v6 = vadd.f32 %v292_v2, %v155_v63  ;;  %v315_v7 = vadd.f32 %v307_v3, %v299_v0  ;;  %v161_v8 = vpop.f32.mrb[8].mxu0 }
  0xfe   :  { %v163_v9 = vpop.f32.mrb[9].mxu0 }
  0xff   :  { %v308_v10 = vmul.f32 %v542_v52, %v300_v6  ;;  %v293_v11 = vmul.f32 %v163_v9, %v161_v8  ;;  %584 = vmatprep.mubr.f32.mxu0 %v315_v7 }
 0x101   :  { %v167_v12 = vpop.f32.mrb[10].mxu0  ;;  %v301_v13 = vadd.f32 %v293_v11, %v161_v8  ;;  %v316_v14 = vadd.f32 %v308_v10, %v300_v6 }
 0x102   :  { %v169_v15 = vpop.f32.mrb[11].mxu0 }
 0x103   :  { %v294_v16 = vmul.f32 %v169_v15, %v167_v12  ;;  %v309_v17 = vmul.f32 %v301_v13, %v270_v61  ;;  %585 = vmatmul.mubr.f32.gmra.mrb[18].mxu0 %v316_v14 }
 0x105   :  { %v302_v18 = vadd.f32 %v294_v16, %v167_v12  ;;  %v317_v19 = vadd.f32 %v309_v17, %v301_v13  ;;  %v173_v20 = vpop.f32.mrb[12].mxu0 }
 0x106   :  { %v175_v21 = vpop.f32.mrb[13].mxu0 }
 0x107   :  { %v310_v22 = vmul.f32 %v545_v60, %v302_v18  ;;  %v295_v23 = vmul.f32 %v175_v21, %v173_v20  ;;  %587 = vmatprep.mubr.f32.mxu1 %v317_v19 }
 0x109   :  { %v318_v24 = vadd.f32 %v310_v22, %v302_v18  ;;  %v179_v25 = vpop.f32.mrb[14].mxu0  ;;  %v303_v26 = vadd.f32 %v295_v23, %v173_v20 }
 0x10a   :  { %v181_v27 = vpop.f32.mrb[15].mxu0 }
 0x10b   :  { %v296_v28 = vmul.f32 %v181_v27, %v179_v25  ;;  %v311_v29 = vmul.f32 %v303_v26, %v280_v5  ;;  %588 = vmatmul.mubr.f32.vlgmr.msra.gmra.mrb[8].mxu1 %v318_v24 }
 0x10d   :  { %v304_v30 = vadd.f32 %v296_v28, %v179_v25  ;;  %v319_v31 = vadd.f32 %v311_v29, %v303_v26 }
 0x10f   :  { %v312_v32 = vmul.f32 %v548_v4, %v304_v30  ;;  %590 = vmatprep.mubr.f32.mxu1 %v319_v31 }
 0x111   :  { %v320_v33 = vadd.f32 %v312_v32, %v304_v30 }
 0x113   :  { %591 = vmatmul.mubr.f32.gmra.mrb[10].mxu1 %v320_v33 }
 0x1ce   :  { %v583_v35 = vpop.f32.mrb[16].mxu0 }
 0x1cf   :  { %v416_v36 = vadd.f32 %v583_v35, %v498_v34  ;;  %v410_v37 = vpop.f32.mrb[17].mxu0 }
 0x1d0   :  { %v411_v38 = vadd.f32 %v498_v34, %v410_v37 }
 0x1d1   :  { %654 = vtanh.f32 %v416_v36 }
 0x1d2   :  { %656 = vtanh.f32 %v411_v38 }
 0x1d6   :  { %v586_v39 = vpop.f32.mrb[18].mxu0 }
 0x1d7   :  { %v426_v40 = vadd.f32 %v586_v39, %v498_v34  ;;  %v420_v41 = vpop.f32.mrb[19].mxu0 }
 0x1d8   :  { %v421_v42 = vadd.f32 %v498_v34, %v420_v41 }
 0x1d9   :  { %658 = vtanh.f32 %v426_v40 }
 0x1da   :  { %660 = vtanh.f32 %v421_v42 }
 0x1db   :  { %v655_v43 = vpop.eup %654 }
 0x1dc   :  { %v657_v44 = vpop.eup %656  ;;  %458 = vst [vmem:[#allocation5 + $0x8] sm:$0xff] %v655_v43 }
 0x1dd   :  { %457 = vst [vmem:[#allocation5] sm:$0xff] %v657_v44 }
 0x1de   :  { %v589_v45 = vpop.f32.mrb[8].mxu1 }
 0x1df   :  { %v436_v46 = vadd.f32 %v589_v45, %v498_v34  ;;  %v430_v47 = vpop.f32.mrb[9].mxu1 }
 0x1e0   :  { %v431_v48 = vadd.f32 %v498_v34, %v430_v47 }
 0x1e1   :  { %662 = vtanh.f32 %v436_v46 }
 0x1e2   :  { %664 = vtanh.f32 %v431_v48 }
 0x1e3   :  { %v659_v49 = vpop.eup %658 }
 0x1e4   :  { %v661_v50 = vpop.eup %660  ;;  %460 = vst [vmem:[#allocation5 + $0x18] sm:$0xff] %v659_v49 }
 0x1e5   :  { %459 = vst [vmem:[#allocation5 + $0x10] sm:$0xff] %v661_v50 }
 0x1e6   :  { %v592_v51 = vpop.f32.mrb[10].mxu1 }
 0x1e7   :  { %v446_v52 = vadd.f32 %v592_v51, %v498_v34  ;;  %v440_v53 = vpop.f32.mrb[11].mxu1 }
 0x1e8   :  { %v441_v54 = vadd.f32 %v498_v34, %v440_v53 }
 0x1e9   :  { %666 = vtanh.f32 %v446_v52 }
 0x1ea   :  { %668 = vtanh.f32 %v441_v54 }
 0x1eb   :  { %v663_v55 = vpop.eup %662 }
 0x1ec   :  { %v665_v56 = vpop.eup %664  ;;  %462 = vst [vmem:[#allocation5 + $0x28] sm:$0xff] %v663_v55 }
 0x1ed   :  { %461 = vst [vmem:[#allocation5 + $0x20] sm:$0xff] %v665_v56 }
 0x1f3   :  { %v667_v57 = vpop.eup %666 }
 0x1f4   :  { %v669_v58 = vpop.eup %668  ;;  %464 = vst [vmem:[#allocation5 + $0x38] sm:$0xff] %v667_v57 }
 0x1f5   :  { %463 = vst [vmem:[#allocation5 + $0x30] sm:$0xff] %v669_v58 }
 0x1f6   :  { %703 = shalt.err (!%p700_p12)
}
 0x1f7   :  { %s704_s2 = scalar_lea.hbm %s851_s4, 1024 }
 0x1f8   :  { %p705_p13 = scmp.ne.s32.totalorder %s851_s4, %s704_s2  ;;  %p708_p0 = scmp.lt.u32.totalorder %s704_s2, %s851_s4 }
 0x1fa   :  { %p710_p1 = pnand %p708_p0, %p705_p13 }
 0x1fc   :  { %713 = shalt.err (!%p710_p1)
}
 0x1fd   :  { %476 = dma.vmem_to_hbm [thread:$0]  %s471_s6, 1024, %s851_s4, [#allocation4], %s719_s25, %s719_s25, %s720_s26  }
 0x1fe   :  { %716 = dma.done.wait [#allocation4], 1024  }
 0x1ff   :  { %717 = vsyncadd [#allocation4], 4294966272 }
 0x200   :  { %480 = vsyncpa [#allocation3], 1 }
 0x201   :  { %481 = vsyncpa [#allocation4], 1 }

</bundles_post_ra>
